<compile_context>
chip_gen: v7x
topology: tpu7x:2x2x1
jax: 0.10.0
libtpu: 0.0.40
codegen_flags: <defaults>
</compile_context>

<pallas_src>
import functools

import jax
import jax.numpy as jnp
from jax.experimental import pallas as pl
from jax.experimental.pallas import tpu as pltpu

_LANE = 128


def _int_pow(base, n):
    """base**n for a static non-negative Python int n, via repeated multiply."""
    n = int(n)
    if n == 0:
        return jnp.ones_like(base)
    result = None
    cur = base
    while n:
        if n & 1:
            result = cur if result is None else result * cur
        n >>= 1
        if n:
            cur = cur * cur
    return result


def _round_up(v, m):
    return -(-v // m) * m


def _asl_kernel(x_ref, y_ref, out_ref, acc_ref, *,
                gamma_neg, gamma_pos, clip, eps, use_sigmoid,
                neg_inv_num_classes, binary_labels, int_gammas,
                blocks_per_core, rows_per_block, num_rows, needs_mask):
    s = pl.program_id(1)   # "arbitrary" accumulation axis (per core)

    @pl.when(s == 0)
    def _init():
        acc_ref[...] = jnp.zeros_like(acc_ref)

    # Always compute in f32 (v5e has no bf16 VPU/EUP); y may arrive int8/bf16.
    x = x_ref[...].astype(jnp.float32)
    y = y_ref[...].astype(jnp.float32)

    xs_pos = jax.nn.sigmoid(x) if use_sigmoid else x
    xs_neg = 1.0 - xs_pos
    if clip is not None and clip > 0:
        xs_neg = jnp.minimum(xs_neg + clip, 1.0)

    use_focal = gamma_neg > 0 or gamma_pos > 0
    if binary_labels:
        # Single log per element (EUP is the scarce slot once DMA saturates).
        pos = y > 0.5
        p_sel = jnp.where(pos, xs_pos, xs_neg)        # == pt for binary labels
        loss = jnp.log(jnp.maximum(p_sel, eps))
        if use_focal:
            base = 1.0 - p_sel
            if int_gammas:
                w = jnp.where(pos, _int_pow(base, gamma_pos),
                              _int_pow(base, gamma_neg))
            else:
                g = jnp.where(pos, jnp.float32(gamma_pos), jnp.float32(gamma_neg))
                w = jnp.power(jnp.maximum(base, eps), g)
            loss = loss * w
    else:
        # General path (soft / smoothed labels): mirrors the PyTorch forward.
        loss = (y * jnp.log(jnp.maximum(xs_pos, eps))
                + (1.0 - y) * jnp.log(jnp.maximum(xs_neg, eps)))
        if use_focal:
            pt = xs_pos * y + xs_neg * (1.0 - y)
            g = gamma_pos * y + gamma_neg * (1.0 - y)
            # eps clamp avoids NaN from exp(g*log(0)); deviation is ~eps**g at pt==1.
            loss = loss * jnp.power(jnp.maximum(1.0 - pt, eps), g)

    if needs_mask:
        # Zero rows that fall past B (partial last block, or a clamped
        # duplicate block on the other core).  Garbage rows may be NaN; the
        # select does not propagate them.
        block_id = pl.program_id(0) * blocks_per_core + s
        row_ids = (jax.lax.broadcasted_iota(jnp.int32, loss.shape, 0)
                   + block_id * rows_per_block)
        loss = jnp.where(row_ids < num_rows, loss, 0.0)

    # Fold the tile into a single (1, C) row; the cross-lane reduce happens
    # only once, in the tiny wrapper-side sum of the per-core partials.
    acc_ref[...] += jnp.sum(loss, axis=0, keepdims=True)

    @pl.when(s == pl.num_programs(1) - 1)
    def _finalize():
        # -sum(loss)/num_classes == -mean(loss, axis=1).sum()
        out_ref[...] = acc_ref[...] * jnp.float32(neg_inv_num_classes)


def _vmem_capacity_bytes():
    """Per-core VMEM capacity; conservative 64 MiB (v7x) fallback."""
    try:
        info = pltpu.get_tpu_info()
        for name in ("vmem_capacity_bytes", "vmem_bytes", "vmem_size_bytes"):
            cap = getattr(info, name, None)
            if cap:
                return int(min(max(int(cap), 16 << 20), 128 << 20))
    except Exception:
        pass
    return 64 * 1024 * 1024


def _pick_rows_per_block(num_rows, num_classes, num_cores, x_item, y_item,
                         vmem_budget_bytes):
    """Batch-tile height: as large as the VMEM budget allows, dtype-aware
    sublane alignment (int8 packs 32 rows/vreg, bf16 16, f32 8)."""
    min_item = min(x_item, y_item)
    align = 32 if min_item == 1 else (16 if min_item == 2 else 8)
    lanes = _round_up(num_classes, _LANE)            # VMEM lane padding
    bytes_per_row = lanes * 2 * (x_item + y_item)    # double-buffered x and y
    tb = max(align, (vmem_budget_bytes // bytes_per_row) // align * align)
    per_core = _round_up(-(-num_rows // num_cores), align)
    tb = min(tb, per_core)                           # no point exceeding a core's share
    if tb >= num_rows:
        return num_rows                              # one full-height block
    return max(8, (tb // 8) * 8)


def asymmetric_loss(x, y, *, gamma_neg=4, gamma_pos=1, clip=0.05, eps=1e-8,
                    use_sigmoid=False, binary_labels=True, num_cores=2,
                    rows_per_block=None):
    """Pallas TPU implementation of AsymmetricLoss.forward for 2-D (B, C) inputs.

    binary_labels=True enables the exact fast path for {0,1} targets (single
    log + VPU power chains); pass binary_labels=False for soft/smoothed labels.
    y may be float32/bfloat16/int8 (upcast in-kernel); prefer int8 labels and
    bf16 logits (use_sigmoid=True) to cut HBM traffic on this mem-bound op.
    """
    B, C = x.shape
    assert y.shape == (B, C), (x.shape, y.shape)

    x_item = jnp.dtype(x.dtype).itemsize
    y_item = jnp.dtype(y.dtype).itemsize

    vmem_cap = _vmem_capacity_bytes()
    if rows_per_block is None:
        rows_per_block = _pick_rows_per_block(
            B, C, num_cores, x_item, y_item, int(vmem_cap * 0.6))
    tb = int(rows_per_block)

    total_blocks = -(-B // tb)
    bpc = -(-total_blocks // num_cores)              # blocks per core
    needs_mask = (num_cores * bpc * tb != B)

    int_gammas = (float(gamma_pos) == int(gamma_pos)
                  and float(gamma_neg) == int(gamma_neg)
                  and gamma_pos >= 0 and gamma_neg >= 0)
    gp = int(gamma_pos) if int_gammas else gamma_pos
    gn = int(gamma_neg) if int_gammas else gamma_neg

    kernel = functools.partial(
        _asl_kernel,
        gamma_neg=gn, gamma_pos=gp, clip=clip, eps=eps,
        use_sigmoid=use_sigmoid, neg_inv_num_classes=-1.0 / C,
        binary_labels=binary_labels, int_gammas=int_gammas,
        blocks_per_core=bpc, rows_per_block=tb, num_rows=B,
        needs_mask=needs_mask)

    if needs_mask:
        def row_block(c, s):
            # Clamp so no block starts past the array; duplicates are masked.
            return (jnp.minimum(c * bpc + s, total_blocks - 1), 0)
    else:
        def row_block(c, s):
            return (c * bpc + s, 0)

    lanes_pad = _round_up(C, _LANE)
    vmem_usage = 2 * tb * lanes_pad * (x_item + y_item) + 4 * lanes_pad * 4
    vmem_limit = min(int(vmem_cap * 0.9), vmem_usage + (16 << 20))

    partials = pl.pallas_call(
        kernel,
        out_shape=jax.ShapeDtypeStruct((num_cores, 1, C), jnp.float32),
        grid_spec=pltpu.PrefetchScalarGridSpec(
            num_scalar_prefetch=0,
            grid=(num_cores, bpc),
            in_specs=[
                pl.BlockSpec((tb, C), row_block),
                pl.BlockSpec((tb, C), row_block),
            ],
            out_specs=pl.BlockSpec((None, 1, C), lambda c, s: (c, 0, 0)),
            scratch_shapes=[pltpu.VMEM((1, C), jnp.float32)],
        ),
        compiler_params=pltpu.CompilerParams(
            dimension_semantics=("parallel", "arbitrary"),
            vmem_limit_bytes=vmem_limit),
    )(x, y)
    # Per-core (1, C) partials already carry the -1/C scale; final add is tiny.
    return jnp.sum(partials)


def _reference(x, y, gamma_neg=4, gamma_pos=1, clip=0.05, eps=1e-8,
               use_sigmoid=False):
    """Pure-JAX reference mirroring the PyTorch forward."""
    x = x.astype(jnp.float32)
    y = y.astype(jnp.float32)
    xs = jax.nn.sigmoid(x) if use_sigmoid else x
    xs_pos = xs
    xs_neg = 1.0 - xs
    if clip is not None and clip > 0:
        xs_neg = jnp.minimum(xs_neg + clip, 1.0)
    los_pos = y * jnp.log(jnp.maximum(xs_pos, eps))
    los_neg = (1.0 - y) * jnp.log(jnp.maximum(xs_neg, eps))
    loss = los_pos + los_neg
    if gamma_neg > 0 or gamma_pos > 0:
        pt = xs_pos * y + xs_neg * (1.0 - y)
        gamma = gamma_pos * y + gamma_neg * (1.0 - y)
        loss = loss * jnp.power(1.0 - pt, gamma)
    return -jnp.sum(jnp.mean(loss, axis=1))


if __name__ == "__main__":
    key = jax.random.PRNGKey(0)
    kx, ky, kl, ks = jax.random.split(key, 4)

    B, C = 16, 128  # small multi-label problem: 16 samples, 128 classes
    # use_sigmoid=False (module default) => x is expected to be probabilities
    x = jax.random.uniform(kx, (B, C), dtype=jnp.float32,
                           minval=0.01, maxval=0.99)
    y = (jax.random.uniform(ky, (B, C), dtype=jnp.float32) > 0.8).astype(
        jnp.float32)

    ref = _reference(x, y)

    # 1) f32 binary labels, probability inputs (module defaults).
    out = jax.block_until_ready(asymmetric_loss(x, y))
    assert jnp.allclose(out, ref, rtol=1e-5, atol=1e-4), (out, ref)

    # 2) int8 labels (HBM-traffic optimization) — exact for binary targets.
    out_i8 = jax.block_until_ready(asymmetric_loss(x, y.astype(jnp.int8)))
    assert jnp.allclose(out_i8, ref, rtol=1e-5, atol=1e-4), (out_i8, ref)

    # 3) use_sigmoid=True path with logits.
    x_logits = jax.random.normal(kl, (B, C), dtype=jnp.float32)
    out_s = jax.block_until_ready(
        asymmetric_loss(x_logits, y, use_sigmoid=True))
    ref_s = _reference(x_logits, y, use_sigmoid=True)
    assert jnp.allclose(out_s, ref_s, rtol=1e-5, atol=1e-4), (out_s, ref_s)

    # 4) ragged batch + non-128 class count + soft labels (general pow path,
    #    exercises the clamped index_map / row-mask path).
    B2, C2 = 7, 37
    x2 = jax.random.uniform(jax.random.fold_in(ks, 0), (B2, C2),
                            dtype=jnp.float32, minval=0.01, maxval=0.99)
    y2 = jax.random.uniform(jax.random.fold_in(ks, 1), (B2, C2),
                            dtype=jnp.float32)
    out2 = jax.block_until_ready(asymmetric_loss(x2, y2, binary_labels=False))
    ref2 = _reference(x2, y2)
    assert jnp.allclose(out2, ref2, rtol=1e-4, atol=1e-4), (out2, ref2)

    print("KERNEL_OK")
</pallas_src>

<mosaic_0001>
module attributes {stable_mosaic.version = 11 : i64} {
  func.func @_asl_kernel(%arg0: i32, %arg1: i32, %arg2: memref<8x128xf32, #tpu.memory_space<vmem>>, %arg3: memref<8x128xf32, #tpu.memory_space<vmem>>, %arg4: memref<1x1x128xf32, #tpu.memory_space<vmem>>, %arg5: memref<1x128xf32, #tpu.memory_space<vmem>>) attributes {dimension_semantics = [#tpu.dimension_semantics<parallel>, #tpu.dimension_semantics<arbitrary>], iteration_bounds = array<i64: 2, 1>, scalar_prefetch = 0 : i64, scratch_operands = 1 : i64, tpu.core_type = #tpu.core_type<tc>, window_params = [{transform_indices = @transform_0, window_bounds = array<i64: 8, 128>}, {transform_indices = @transform_1, window_bounds = array<i64: 8, 128>}, {transform_indices = @transform_2, window_bounds = array<i64: 1, 1, 128>}]} {
    %c0_i32 = arith.constant 0 : i32
    %0 = arith.cmpi eq, %arg1, %c0_i32 : i32
    %1 = arith.extui %0 : i1 to i32
    %c0_i32_0 = arith.constant 0 : i32
    %2 = arith.cmpi ne, %1, %c0_i32_0 : i32
    scf.if %2 {
      %cst_16 = arith.constant 0.000000e+00 : f32
      %31 = vector.broadcast %cst_16 : f32 to vector<1x128xf32>
      %c0_17 = arith.constant 0 : index
      %c0_18 = arith.constant 0 : index
      %32 = vector.load %arg5[%c0_17, %c0_18] : memref<1x128xf32, #tpu.memory_space<vmem>>, vector<1x128xf32>
      tpu.vector_store %arg5[%c0_17, %c0_18], %31 {strides = array<i32>} : memref<1x128xf32, #tpu.memory_space<vmem>>, vector<1x128xf32>,
    } else {
    }
    %c0 = arith.constant 0 : index
    %c0_1 = arith.constant 0 : index
    %3 = vector.load %arg2[%c0, %c0_1] : memref<8x128xf32, #tpu.memory_space<vmem>>, vector<8x128xf32>
    %c0_2 = arith.constant 0 : index
    %c0_3 = arith.constant 0 : index
    %4 = vector.load %arg3[%c0_2, %c0_3] : memref<8x128xf32, #tpu.memory_space<vmem>>, vector<8x128xf32>
    %cst = arith.constant 1.000000e+00 : f32
    %5 = vector.broadcast %cst : f32 to vector<8x128xf32>
    %6 = arith.subf %5, %3 : vector<8x128xf32>
    %cst_4 = arith.constant 5.000000e-02 : f32
    %7 = vector.broadcast %cst_4 : f32 to vector<8x128xf32>
    %8 = arith.addf %6, %7 : vector<8x128xf32>
    %cst_5 = arith.constant 1.000000e+00 : f32
    %9 = vector.broadcast %cst_5 : f32 to vector<8x128xf32>
    %10 = arith.minimumf %8, %9 : vector<8x128xf32>
    %cst_6 = arith.constant 5.000000e-01 : f32
    %11 = vector.broadcast %cst_6 : f32 to vector<8x128xf32>
    %12 = arith.cmpf ogt, %4, %11 : vector<8x128xf32>
    %13 = arith.select %12, %3, %10 : vector<8x128xi1>, vector<8x128xf32>
    %cst_7 = arith.constant 9.99999993E-9 : f32
    %14 = vector.broadcast %cst_7 : f32 to vector<8x128xf32>
    %15 = arith.maximumf %13, %14 : vector<8x128xf32>
    %16 = math.log %15 : vector<8x128xf32>
    %cst_8 = arith.constant 1.000000e+00 : f32
    %17 = vector.broadcast %cst_8 : f32 to vector<8x128xf32>
    %18 = arith.subf %17, %13 : vector<8x128xf32>
    %19 = arith.mulf %18, %18 : vector<8x128xf32>
    %20 = arith.mulf %19, %19 : vector<8x128xf32>
    %21 = arith.select %12, %18, %20 : vector<8x128xi1>, vector<8x128xf32>
    %22 = arith.mulf %16, %21 : vector<8x128xf32>
    %c0_9 = arith.constant 0 : index
    %c0_10 = arith.constant 0 : index
    %23 = vector.load %arg5[%c0_9, %c0_10] : memref<1x128xf32, #tpu.memory_space<vmem>>, vector<1x128xf32>
    %cst_11 = arith.constant dense<0.000000e+00> : vector<128xf32>
    %24 = vector.multi_reduction <add>, %22, %cst_11 [0] : vector<8x128xf32> to vector<128xf32>
    %25 = vector.shape_cast %24 : vector<128xf32> to vector<1x128xf32>
    %26 = arith.addf %23, %25 : vector<1x128xf32>
    %c0_12 = arith.constant 0 : index
    %c0_13 = arith.constant 0 : index
    %27 = vector.load %arg5[%c0_12, %c0_13] : memref<1x128xf32, #tpu.memory_space<vmem>>, vector<1x128xf32>
    tpu.vector_store %arg5[%c0_12, %c0_13], %26 {strides = array<i32>} : memref<1x128xf32, #tpu.memory_space<vmem>>, vector<1x128xf32>,
    %c0_i32_14 = arith.constant 0 : i32
    %28 = arith.cmpi eq, %arg1, %c0_i32_14 : i32
    %29 = arith.extui %28 : i1 to i32
    %c0_i32_15 = arith.constant 0 : i32
    %30 = arith.cmpi ne, %29, %c0_i32_15 : i32
    scf.if %30 {
      %c0_16 = arith.constant 0 : index
      %c0_17 = arith.constant 0 : index
      %31 = vector.load %arg5[%c0_16, %c0_17] : memref<1x128xf32, #tpu.memory_space<vmem>>, vector<1x128xf32>
      %cst_18 = arith.constant -7.812500e-03 : f32
      %32 = vector.broadcast %cst_18 : f32 to vector<1x128xf32>
      %33 = arith.mulf %31, %32 : vector<1x128xf32>
      %c0_19 = arith.constant 0 : index
      %c0_20 = arith.constant 0 : index
      %c0_21 = arith.constant 0 : index
      %34 = vector.load %arg4[%c0_19, %c0_20, %c0_21] : memref<1x1x128xf32, #tpu.memory_space<vmem>>, vector<1x1x128xf32>
      %35 = vector.shape_cast %34 : vector<1x1x128xf32> to vector<1x128xf32>
      %36 = vector.shape_cast %33 : vector<1x128xf32> to vector<1x1x128xf32>
      tpu.vector_store %arg4[%c0_19, %c0_20, %c0_21], %36 {strides = array<i32>} : memref<1x1x128xf32, #tpu.memory_space<vmem>>, vector<1x1x128xf32>,
    } else {
    }
    return
  }
  func.func @transform_0(%arg0: i32, %arg1: i32) -> (i32, i32) {
    %c1_i32 = arith.constant 1 : i32
    %0 = arith.muli %arg0, %c1_i32 : i32
    %1 = arith.addi %0, %arg1 : i32
    %c0_i32 = arith.constant 0 : i32
    %c0_i32_0 = arith.constant 0 : i32
    return %1, %c0_i32 : i32, i32
  }
  func.func @transform_1(%arg0: i32, %arg1: i32) -> (i32, i32) {
    %c1_i32 = arith.constant 1 : i32
    %0 = arith.muli %arg0, %c1_i32 : i32
    %1 = arith.addi %0, %arg1 : i32
    %c0_i32 = arith.constant 0 : i32
    %c0_i32_0 = arith.constant 0 : i32
    return %1, %c0_i32 : i32, i32
  }
  func.func @transform_2(%arg0: i32, %arg1: i32) -> (i32, i32, i32) {
    %c0_i32 = arith.constant 0 : i32
    %c0_i32_0 = arith.constant 0 : i32
    %c0_i32_1 = arith.constant 0 : i32
    return %arg0, %c0_i32, %c0_i32_0 : i32, i32, i32
  }
}

</mosaic_0001>

<bundles_post_ra>
// kernel: tpu_custom_call.1
= control target key start
LH: loop header
LB: loop body
LE: loop exit
PB: predicated region body
PF: predicated region fallthrough
CT: control target
= control target key end

     0   :  { %7 = vsyncpa [#allocation4], 0  ;;  %s834_s0 = inlined_call_operand.hbm [shape: f32[16,128], index: 0, kind: input, shape index: {}]   ;;  %s835_s1 = inlined_call_operand.hbm [shape: f32[16,128], index: 1, kind: input, shape index: {}]   ;;  %s836_s2 = inlined_call_operand.hbm [shape: f32[2,1,128], index: 2, kind: output, shape index: {}]  }
   0x1   :  { %9 = vsyncpa [#allocation4 + $0x1], 0 }
   0x2   :  { %10 = vsyncpa [#allocation7], 0 }
   0x3   :  { %12 = vsyncpa [#allocation7 + $0x1], 0 }
   0x4   :  { %13 = vsyncpa [#allocation5], 0 }
   0x5   :  { %15 = vsyncpa [#allocation5 + $0x1], 0  ;;  %s613_s9 = smov 0   ;;  %s615_s10 = smov 0  }
   0x6   :  { %s617_s11 = smov 0   ;;  %s619_s12 = smov 0  }
   0x7   :  { %s621_s13 = smov 0   ;;  %s623_s14 = smov 0  }
   0x8 LB: > { %s362_s15 = sadd.s32 4294967295, %s592_s14   ;;  %s363_s16 = sadd.s32 4294967294, %s592_s14   ;;  %s592_s14 = sphi %s623_s14, %s21_s14   ;;  %s588_s13 = sphi %s621_s13, %s856_s13   ;;  %s584_s12 = sphi %s619_s12, %s855_s12   ;;  %s580_s11 = sphi %s617_s11, %s854_s11   ;;  %s576_s10 = sphi %s615_s10, %s853_s10   ;;  %s572_s9 = sphi %s613_s9, %s852_s9  }
   0x9   : > { %s33_s17 = sadd.s32 1, %s588_s13  ;;  %s42_s18 = sadd.s32 1, %s580_s11 }
   0xa   : > { %p35_p0 = scmp.ge.s32.totalorder %s33_s17, 2  ;;  %p49_p1 = scmp.ne.s32.totalorder %s580_s11, %s576_s10 }
   0xb   : > { %p50_p2 = scmp.eq.s32.totalorder %s592_s14, 0  ;;  %p55_p3 = scmp.ne.s32.totalorder %s576_s10, %s572_s9 }
   0xc   : > { %s858_s17 = smov (%p35_p0, %s33_s17), 0  ;;  %p56_p5 = scmp.eq.s32.totalorder %s362_s15, 0 }
   0xd   : > { %p654_p4 = por %p50_p2, %p49_p1  ;;  %s39_s20 = ssub.s32 %s588_s13, %s858_s17 }
   0xe   : > { %p107_p6 = scmp.eq.s32.totalorder %s362_s15, 1  ;;  %p40_p7 = scmp.eq.s32.totalorder %s39_s20, 0 }
   0xf   : > { %p660_p8 = por %p56_p5, %p55_p3  ;;  %p113_p10 = scmp.eq.s32.totalorder %s363_s16, 1 }
  0x10   : > { %p664_p9 = por %p107_p6, %p49_p1  ;;  %p393_p13 = scmp.lt.s32.totalorder %s592_s14, 2 }
  0x11   : > { %s840_s21 = scalar_select %p660_p8, 1, 0 }
  0x12   : > { %s841_s22 = scalar_select %p664_p9, 1, 0 }
  0x13   : > { %s669_s23 = scalar_select %p40_p7, %s580_s11, %s42_s18  }
  0x14   : > { %p671_p11 = por %p113_p10, %p55_p3  ;;  %s678_s25 = sand.u32 1, %s580_s11  }
  0x15   : > { %s366_s26 = sshll.u32 %s678_s25, 3  ;;  %s367_s27 = sshll.u32 %s588_s13, 7 }
  0x16   : > { %s842_s24 = scalar_select %p671_p11, 1, 0 }
  0x17   : > { %s687_s30 = scalar_lea.hbm %s834_s0, %s367_s27  ;;  %s137_s3 = scalar_lea.vmem [#allocation3], %s366_s26 }
  0x18   : > { %s145_s4 = sshll.u32 %s137_s3, 4  ;;  %p695_p0 = pnand %p393_p13, %p654_p4  ;;  %s691_s4 = int_to_ptr.vmem [resolvable:$true] %s145_s4 }
  0x19   : > { %s134_s6 = scalar_lea.sflag [#allocation4], %s678_s25  ;;  %s446_s7 = scalar_lea.hbm %s687_s30, 128 }
  0x1a   : > { %p447_p3 = scmp.ne.s32.totalorder %s687_s30, %s446_s7  ;;  %p448_p5 = pneg %p695_p0 }
  0x1b   : > { %s451_s16 = scalar_lea.hbm %s834_s0, 256  ;;  %p452_p4 = scmp.lt.u32.totalorder %s687_s30, %s834_s0 }
  0x1c   : > { %p449_p6 = pnand %p448_p5, %p447_p3  ;;  %p453_p10 = scmp.lt.u32.totalorder %s451_s16, %s446_s7 }
  0x1d   : > { %p455_p12 = scmp.lt.u32.totalorder %s446_s7, %s687_s30 }
  0x1e   : > { %p450_p7 = pneg %p449_p6  ;;  %p454_p13 = por %p453_p10, %p452_p4 }
  0x20   : > { %p456_p1 = por %p455_p12, %p454_p13 }
  0x22   : > { %p457_p2 = pnand %p456_p1, %p450_p7 }
  0x24   : > { %460 = shalt.err (!%p457_p2)
}
  0x25   : > { %s461_s20 = scalar_lea.vmem %s691_s4, 128  ;;  %s594_s28 = smov [#allocation3]  }
  0x26   : > { %p462_p3 = scmp.ne.s32.totalorder %s691_s4, %s461_s20  ;;  %s466_s29 = sshll.u32 %s594_s28, 4  ;;  %s467_s29 = int_to_ptr.vmem [resolvable:$false] %s466_s29 }
  0x27   : > { %s468_s3 = scalar_lea.vmem %s467_s29, 256  ;;  %p469_p9 = scmp.lt.s32.totalorder %s691_s4, %s467_s29 }
  0x28   : > { %p464_p6 = pnand %p462_p3, %p448_p5  ;;  %p470_p4 = scmp.lt.s32.totalorder %s468_s3, %s461_s20 }
  0x2a   : > { %p465_p11 = pneg %p464_p6  ;;  %p471_p10 = por %p470_p4, %p469_p9 }
  0x2c   : > { %p472_p12 = pnand %p471_p10, %p465_p11 }
  0x2e   : > { %475 = shalt.err (!%p472_p12)
}
  0x2f   : > { %385 = dma.hbm_to_vmem [thread:$0]  (!%p695_p0), %s687_s30, 128, %s691_s4, %s134_s6  }
  0x30   : > { %p844_p1 = scmp.lt.s32.totalorder %s592_s14, 3  ;;  %p845_p2 = scmp.ge.s32.totalorder %s592_s14, 1 }
  0x31   : > { %s740_s16 = scalar_lea.hbm %s835_s1, %s367_s27  ;;  %s156_s18 = scalar_lea.vmem [#allocation6], %s366_s26 }
  0x32   : > { %p731_p7 = pnand %p845_p2, %p844_p1  ;;  %s164_s19 = sshll.u32 %s156_s18, 4  ;;  %s165_s19 = int_to_ptr.vmem [resolvable:$true] %s164_s19 }
  0x33   : > { %s153_s30 = scalar_lea.sflag [#allocation7], %s678_s25  ;;  %s476_s4 = scalar_lea.hbm %s740_s16, 128 }
  0x34   : > { %s846_s7 = scalar_select %p731_p7, 1, 0 }
  0x35   : > { %p477_p9 = scmp.ne.s32.totalorder %s740_s16, %s476_s4  ;;  %s481_s27 = scalar_lea.hbm %s835_s1, 256 }
  0x36   : > { %p482_p3 = scmp.lt.u32.totalorder %s740_s16, %s835_s1  ;;  %p483_p6 = scmp.lt.u32.totalorder %s481_s27, %s476_s4 }
  0x37   : > { %p479_p11 = pnand %p477_p9, %p448_p5  ;;  %p485_p10 = scmp.lt.u32.totalorder %s476_s4, %s740_s16 }
  0x38   : > { %p484_p4 = por %p483_p6, %p482_p3 }
  0x39   : > { %p480_p13 = pneg %p479_p11 }
  0x3a   : > { %p486_p12 = por %p485_p10, %p484_p4 }
  0x3c   : > { %p487_p1 = pnand %p486_p12, %p480_p13 }
  0x3e   : > { %490 = shalt.err (!%p487_p1)
}
  0x3f   : > { %s491_s25 = scalar_lea.vmem %s165_s19, 128  ;;  %s595_s26 = smov [#allocation6]  }
  0x40   : > { %p492_p2 = scmp.ne.s32.totalorder %s165_s19, %s491_s25  ;;  %s496_s3 = sshll.u32 %s595_s26, 4  ;;  %s497_s3 = int_to_ptr.vmem [resolvable:$false] %s496_s3 }
  0x41   : > { %s498_s8 = scalar_lea.vmem %s497_s3, 256  ;;  %p499_p8 = scmp.lt.s32.totalorder %s165_s19, %s497_s3 }
  0x42   : > { %p494_p9 = pnand %p492_p2, %p448_p5  ;;  %p500_p7 = scmp.lt.s32.totalorder %s498_s8, %s491_s25 }
  0x44   : > { %p495_p11 = pneg %p494_p9  ;;  %p501_p3 = por %p500_p7, %p499_p8 }
  0x46   : > { %p502_p6 = pnand %p501_p3, %p495_p11 }
  0x48   : > { %505 = shalt.err (!%p502_p6)
}
  0x49   : > { %388 = dma.hbm_to_vmem [thread:$0]  (!%p695_p0), %s740_s16, 128, %s165_s19, %s153_s30  }
  0x4a   : > { %p847_p13 = scmp.ne.s32.totalorder %s846_s7, 0 }
  0x4b   : > { %s767_s15 = sand.u32 (!%p847_p13), 1, %s576_s10   ;;  %p848_p5 = scmp.ne.s32.totalorder (!%p847_p13), %s840_s21, 0 }
  0x4c   : > { %173 = sbr.rel (%p847_p13) target bundleno = 149 (0x95), region = 28  ;;  %s371_s18 = sshll.u32 (!%p847_p13), %s767_s15, 3 }
  0x4d   : > { %s176_s4 = scalar_lea.sflag (!%p847_p13), [#allocation4], %s767_s15  ;;  %s179_s6 = scalar_lea.vmem (!%p847_p13), [#allocation3], %s371_s18 }
  0x53   : > { %559 = dma.done.wait (%p848_p5), %s176_s4, 128  }
  0x54   : > { %561 = vsyncadd (%p848_p5), %s176_s4, 4294967168  ;;  %s185_s5 = scalar_lea.sflag [#allocation7], %s767_s15  ;;  %s188_s16 = scalar_lea.vmem [#allocation6], %s371_s18 }
  0x55   : > { %563 = dma.done.wait (%p848_p5), %s185_s5, 128  }
  0x56   : > { %565 = vsyncadd (%p848_p5), %s185_s5, 4294967168  ;;  %v596_v0 = vmov 0.0   ;;  %v220_v1 = vld [vmem:[%s179_s6] sm:$0xff]  ;;  %v221_v2 = vld [vmem:[%s188_s16] sm:$0xff]  ;;  %s212_s21 = scalar_lea.vmem [#allocation8], %s767_s15  ;;  %s373_s19 = sshll.u32 %s584_s12, 4 }
  0x57   : > { %219 = vst [vmem:[#allocation2] sm:$0x1] %v596_v0  ;;  %v222_v3 = vsub.f32 1.0, %v220_v1  ;;  %vm225_vm0 = vcmp.gt.f32.partialorder %v221_v2, 0.5  ;;  %s263_s7 = sshll.u32 %s212_s21, 4  ;;  %s787_s27 = scalar_lea.hbm %s836_s2, %s373_s19  ;;  %s782_s7 = int_to_ptr.vmem [resolvable:$true] %s263_s7 }
  0x58   : > { %s251_s28 = scalar_lea.sflag [#allocation5], %s767_s15  ;;  %s506_s29 = scalar_lea.vmem %s782_s7, 16 }
  0x59   : > { %v223_v4 = vadd.f32 0.05, %v222_v3  ;;  %p507_p8 = scmp.ne.s32.totalorder %s782_s7, %s506_s29  ;;  %p849_p0 = scmp.ne.s32.totalorder %s841_s22, 0 }
  0x5a   : > { %s597_s12 = smov [#allocation8]  }
  0x5b   : > { %v224_v5 = vmin.f32 %v223_v4, 1.0  ;;  %p508_p7 = pnand %p507_p8, %p849_p0  ;;  %s510_s25 = sshll.u32 %s597_s12, 4  ;;  %s511_s25 = int_to_ptr.vmem [resolvable:$false] %s510_s25 }
  0x5c   : > { %s512_s26 = scalar_lea.vmem %s511_s25, 32  ;;  %p513_p10 = scmp.lt.s32.totalorder %s782_s7, %s511_s25 }
  0x5d   : > { %v226_v6 = vsel %vm225_vm0, %v220_v1, %v224_v5  ;;  %p509_p4 = pneg %p508_p7  ;;  %p514_p12 = scmp.lt.s32.totalorder %s512_s26, %s506_s29 }
  0x5e   : > { %v227_v7 = vmax.f32 %v226_v6, 1e-08  ;;  %v230_v8 = vsub.f32 1.0, %v226_v6  ;;  %v235_v20 = vld [vmem:[#allocation2] sm:$0x1] }
  0x5f   : > { %p515_p1 = por %p514_p12, %p513_p10 }
  0x60   : > { %444 = vlog2.f32 %v227_v7  ;;  %v231_v9 = vmul.f32 %v230_v8, %v230_v8 }
  0x61   : > { %p516_p2 = pnand %p515_p1, %p509_p4 }
  0x62   : > { %v232_v10 = vmul.f32 %v231_v9, %v231_v9 }
  0x64   : > { %v233_v12 = vsel %vm225_vm0, %v230_v8, %v232_v10 }
  0x6a   : > { %v445_v11 = vpop.eup %444 }
  0x6b   : > { %v229_v13 = vmul.f32 0.6931472, %v445_v11 }
  0x6d   : > { %v234_v14 = vmul.f32 %v233_v12, %v229_v13 }
  0x6f   : > { %v236_v15 = vrot.slane %v234_v14, 4 }
  0x71   : > { %v237_v16 = vadd.f32 %v236_v15, %v234_v14 }
  0x73   : > { %v238_v17 = vrot.slane %v237_v16, 2 }
  0x75   : > { %v239_v18 = vadd.f32 %v238_v17, %v237_v16 }
  0x77   : > { %v240_v19 = vrot.slane %v239_v18, 1 }
  0x79   : > { %v241_v21 = vadd.f32 %v240_v19, %v239_v18 }
  0x7b   : > { %v242_v22 = vadd.f32 %v241_v21, %v235_v20 }
  0x7d   : > { %243 = vst [vmem:[#allocation2] sm:$0x1] %v242_v22 }
  0x84   : > { %v247_v23 = vld [vmem:[#allocation2] sm:$0x1] }
  0x85   : > { %v248_v24 = vmul.f32 -0.0078125, %v247_v23 }
  0x87   : > { %249 = vst [vmem:[%s212_s21] sm:$0x1] %v248_v24 }
  0x88   : > { %519 = shalt.err (!%p516_p2)
}
  0x89   : > { %s520_s3 = scalar_lea.hbm %s787_s27, 16  ;;  %s524_s18 = scalar_lea.hbm %s836_s2, 32 }
  0x8a   : > { %p521_p9 = scmp.ne.s32.totalorder %s787_s27, %s520_s3  ;;  %p525_p6 = scmp.lt.u32.totalorder %s787_s27, %s836_s2 }
  0x8b   : > { %p526_p13 = scmp.lt.u32.totalorder %s524_s18, %s520_s3  ;;  %p528_p8 = scmp.lt.u32.totalorder %s520_s3, %s787_s27 }
  0x8c   : > { %p522_p11 = pnand %p521_p9, %p849_p0 }
  0x8d   : > { %p527_p5 = por %p526_p13, %p525_p6 }
  0x8e   : > { %p523_p3 = pneg %p522_p11 }
  0x8f   : > { %p529_p7 = por %p528_p8, %p527_p5 }
  0x91   : > { %p530_p4 = pnand %p529_p7, %p523_p3 }
  0x93   : > { %533 = shalt.err (!%p530_p4)
}
  0x94   : > { %380 = dma.vmem_to_hbm [thread:$0]  (%p849_p0), %s782_s7, 16, %s787_s27, %s251_s28  }
  0x95 PF: > { %s275_s5 = sand.u32 1, %s572_s9   ;;  %p850_p10 = scmp.ne.s32.totalorder %s842_s24, 0 }
  0x96   : > { %p851_p12 = scmp.ge.s32.totalorder %s592_s14, 2  ;;  %s276_s16 = scalar_lea.sflag [#allocation5], %s275_s5 }
  0x98   : > { %p390_p1 = pnand %p851_p12, %p850_p10 }
  0x9a   : > { %567 = dma.done.wait (!%p390_p1), %s276_s16, 16  }
  0x9b   : > { %569 = vsyncadd (!%p390_p1), %s276_s16, 4294967280  ;;  %s21_s14 = sadd.s32 1, %s592_s14   ;;  %s852_s9 = smov %s576_s10 }
  0x9c   : > { %p18_p2 = scmp.ge.s32.totalorder %s21_s14, 4   ;;  %s853_s10 = smov %s580_s11 }
  0x9d   : > { %s854_s11 = smov %s669_s23  ;;  %s855_s12 = smov %s588_s13 }
  0x9e   : > { %s856_s13 = smov %s858_s17  ;;  %20 = sbr.rel (!%p18_p2) target bundleno = 8 (0x8), region = 94 }
  0xa5   :  { %280 = vsyncpa [#allocation4], 1 }
  0xa6   :  { %282 = vsyncpa [#allocation4 + $0x1], 1 }
  0xa7   :  { %283 = vsyncpa [#allocation7], 1 }
  0xa8   :  { %285 = vsyncpa [#allocation7 + $0x1], 1 }
  0xa9   :  { %286 = vsyncpa [#allocation5], 1 }
  0xaa   :  { %288 = vsyncpa [#allocation5 + $0x1], 1 }

</bundles_post_ra>
